<compile_context>
chip_gen: v6e
topology: v6e:2x2x1
jax: 0.10.0
libtpu: 0.0.40
codegen_flags: <defaults>
</compile_context>

<pallas_src>
import math

import jax
import jax.numpy as jnp
import numpy as np
from jax.experimental import pallas as pl
from jax.experimental.pallas import tpu as pltpu

COMPUTE_DTYPE = jnp.bfloat16   # MXU operand dtype (accumulation stays f32)
LANE = 128                     # TPU lane width: time tiles are multiples of this


# ---------------------------------------------------------------------------
# Wrapper-side layout plumbing (pure JAX, cheap): im2col, zero-stuffing, padding
# ---------------------------------------------------------------------------
def _time_tile(t: int) -> int:
    # lane-dense tile; bigger tiles for long clips to amortize per-step overhead
    return LANE if t <= 1024 else 4 * LANE


def _pad_time(x: jax.Array, t_pad: int) -> jax.Array:
    t = x.shape[-1]
    if t == t_pad:
        return x
    return jnp.pad(x, ((0, 0),) * (x.ndim - 1) + ((0, t_pad - t),))


def unfold_time(x_bct: jax.Array, kernel_size: int, dilation: int = 1) -> jax.Array:
    """im2col along time with 'same' zero padding.

    Returns (B, K*C, T); row index = k*C + c, matching the weight flattening in
    make_conv_params().  # TODO(synk): exact 'same' convention for even kernels
    in the recipe's custom Conv1d is unknown; left-biased padding is used.
    """
    if kernel_size == 1:
        return x_bct
    _, _, t = x_bct.shape
    span = dilation * (kernel_size - 1)
    pad_left = span // 2
    pad_right = span - pad_left
    xp = jnp.pad(x_bct, ((0, 0), (0, 0), (pad_left, pad_right)))
    taps = [xp[:, :, k * dilation:k * dilation + t] for k in range(kernel_size)]
    return jnp.concatenate(taps, axis=1)


def upsample_zeros(x_bct: jax.Array, factor: int) -> jax.Array:
    b, c, t = x_bct.shape
    out = jnp.zeros((b, c, t, factor), x_bct.dtype).at[:, :, :, 0].set(x_bct)
    return out.reshape(b, c, t * factor)


# ---------------------------------------------------------------------------
# Pallas kernel 1: conv-as-matmul with fused bias + activation epilogue
#   y[b, :, t] = act(W @ x_unf[b, :, t] + bias)
# ---------------------------------------------------------------------------
def _make_proj_kernel(activation: str):
    def kernel(*refs):
        if activation == "prelu":
            w_ref, b_ref, a_ref, x_ref, o_ref = refs
        else:
            w_ref, b_ref, x_ref, o_ref = refs
        acc = jnp.dot(w_ref[...], x_ref[...], preferred_element_type=jnp.float32)
        acc = acc + b_ref[...]
        if activation == "linear":
            y = acc
        elif activation == "prelu":
            y = jnp.where(acc >= 0.0, acc, a_ref[...] * acc)
        elif activation == "glu":
            h = acc.shape[0] // 2
            y = acc[:h] * jax.nn.sigmoid(acc[h:])
        else:
            raise ValueError(activation)
        o_ref[...] = y.astype(o_ref.dtype)
    return kernel


def pallas_proj(w, b, x_unf, *, activation="linear", alpha=None,
                out_dtype=jnp.float32):
    B, cin, T = x_unf.shape
    o_rows, cin_w = w.shape
    assert cin_w == cin, (cin_w, cin)
    o_out = o_rows // 2 if activation == "glu" else o_rows

    tt = _time_tile(T)
    t_pad = pl.cdiv(T, tt) * tt
    x16 = _pad_time(x_unf, t_pad).astype(COMPUTE_DTYPE)

    inputs = [w.astype(COMPUTE_DTYPE), b.astype(jnp.float32)]
    in_specs = [
        pl.BlockSpec((o_rows, cin), lambda bi, ti: (0, 0)),   # weights: loaded once
        pl.BlockSpec((o_rows, 1), lambda bi, ti: (0, 0)),
    ]
    if activation == "prelu":
        inputs.append(alpha.astype(jnp.float32))
        in_specs.append(pl.BlockSpec((o_out, 1), lambda bi, ti: (0, 0)))
    inputs.append(x16)
    in_specs.append(pl.BlockSpec((None, cin, tt), lambda bi, ti: (bi, 0, ti)))

    out = pl.pallas_call(
        _make_proj_kernel(activation),
        out_shape=jax.ShapeDtypeStruct((B, o_out, t_pad), out_dtype),
        grid_spec=pltpu.PrefetchScalarGridSpec(
            num_scalar_prefetch=0,
            grid=(B, t_pad // tt),
            in_specs=in_specs,
            out_specs=pl.BlockSpec((None, o_out, tt), lambda bi, ti: (bi, 0, ti)),
        ),
        compiler_params=pltpu.CompilerParams(
            dimension_semantics=("parallel", "parallel")),
    )(*inputs)
    return out[:, :, :T]


def ref_proj(w, b, x_unf, *, activation="linear", alpha=None,
             out_dtype=jnp.float32):
    acc = jnp.einsum("oc,bct->bot", w.astype(COMPUTE_DTYPE),
                     x_unf.astype(COMPUTE_DTYPE),
                     preferred_element_type=jnp.float32)
    acc = acc + b[None].astype(jnp.float32)
    if activation == "linear":
        y = acc
    elif activation == "prelu":
        y = jnp.where(acc >= 0.0, acc, alpha[None] * acc)
    elif activation == "glu":
        h = acc.shape[1] // 2
        y = acc[:, :h] * jax.nn.sigmoid(acc[:, h:])
    else:
        raise ValueError(activation)
    return y.astype(out_dtype)


def proj(w, b, x_unf, *, activation="linear", alpha=None, use_pallas=True):
    fn = pallas_proj if use_pallas else ref_proj
    return fn(w, b, x_unf, activation=activation, alpha=alpha)


# ---------------------------------------------------------------------------
# Pallas kernel 2: fused WaveNet residual block
#   z    = Wg @ x_unf + bg (+ Wc @ cond)
#   gate = tanh(z[:G]) * sigmoid(z[G:])
#   x'   = x + Wr @ gate + br          skip' = skip_in + Ws @ gate + bs
# ---------------------------------------------------------------------------
def _make_wavenet_kernel(has_cond: bool):
    def kernel(*refs):
        if has_cond:
            (wg, bg, wc, ws, bs, wr, br,
             xu, x, c, sk_in, x_out, sk_out) = refs
        else:
            (wg, bg, ws, bs, wr, br,
             xu, x, sk_in, x_out, sk_out) = refs
        z = jnp.dot(wg[...], xu[...], preferred_element_type=jnp.float32) + bg[...]
        if has_cond:
            z = z + jnp.dot(wc[...], c[...], preferred_element_type=jnp.float32)
        g = z.shape[0] // 2
        gate = jnp.tanh(z[:g]) * jax.nn.sigmoid(z[g:])
        gate_c = gate.astype(COMPUTE_DTYPE)
        skip = jnp.dot(ws[...], gate_c, preferred_element_type=jnp.float32) + bs[...]
        res = jnp.dot(wr[...], gate_c, preferred_element_type=jnp.float32) + br[...]
        x_out[...] = (x[...] + res).astype(x_out.dtype)
        sk_out[...] = (sk_in[...] + skip).astype(sk_out.dtype)
    return kernel


def pallas_wavenet_block(p, x_unf, x, cond, skip_in):
    B, cink, T = x_unf.shape
    r = x.shape[1]
    s = skip_in.shape[1]
    g2 = p["w_gate"].shape[0]
    g = g2 // 2
    has_cond = cond is not None

    tt = _time_tile(T)
    t_pad = pl.cdiv(T, tt) * tt
    xu = _pad_time(x_unf, t_pad).astype(COMPUTE_DTYPE)
    xp = _pad_time(x, t_pad).astype(jnp.float32)
    sk = _pad_time(skip_in, t_pad).astype(jnp.float32)

    const = lambda shape: pl.BlockSpec(shape, lambda bi, ti: (0, 0))
    tiled = lambda ch: pl.BlockSpec((None, ch, tt), lambda bi, ti: (bi, 0, ti))

    inputs = [p["w_gate"].astype(COMPUTE_DTYPE), p["b_gate"].astype(jnp.float32)]
    in_specs = [const((g2, cink)), const((g2, 1))]
    if has_cond:
        cc = cond.shape[1]
        inputs.append(p["w_cond"].astype(COMPUTE_DTYPE))
        in_specs.append(const((g2, cc)))
    inputs += [p["w_skip"].astype(COMPUTE_DTYPE), p["b_skip"].astype(jnp.float32),
               p["w_res"].astype(COMPUTE_DTYPE), p["b_res"].astype(jnp.float32)]
    in_specs += [const((s, g)), const((s, 1)), const((r, g)), const((r, 1))]
    inputs += [xu, xp]
    in_specs += [tiled(cink), tiled(r)]
    if has_cond:
        inputs.append(_pad_time(cond, t_pad).astype(COMPUTE_DTYPE))
        in_specs.append(tiled(cc))
    inputs.append(sk)
    in_specs.append(tiled(s))

    x_new, skip_out = pl.pallas_call(
        _make_wavenet_kernel(has_cond),
        out_shape=(jax.ShapeDtypeStruct((B, r, t_pad), jnp.float32),
                   jax.ShapeDtypeStruct((B, s, t_pad), jnp.float32)),
        grid_spec=pltpu.PrefetchScalarGridSpec(
            num_scalar_prefetch=0,
            grid=(B, t_pad // tt),
            in_specs=in_specs,
            out_specs=(tiled(r), tiled(s)),
        ),
        compiler_params=pltpu.CompilerParams(
            dimension_semantics=("parallel", "parallel")),
    )(*inputs)
    return x_new[:, :, :T], skip_out[:, :, :T]


def ref_wavenet_block(p, x_unf, x, cond, skip_in):
    z = jnp.einsum("oc,bct->bot", p["w_gate"].astype(COMPUTE_DTYPE),
                   x_unf.astype(COMPUTE_DTYPE),
                   preferred_element_type=jnp.float32) + p["b_gate"][None]
    if cond is not None:
        z = z + jnp.einsum("oc,bct->bot", p["w_cond"].astype(COMPUTE_DTYPE),
                           cond.astype(COMPUTE_DTYPE),
                           preferred_element_type=jnp.float32)
    g = z.shape[1] // 2
    gate = jnp.tanh(z[:, :g]) * jax.nn.sigmoid(z[:, g:])
    gate_c = gate.astype(COMPUTE_DTYPE)
    skip = jnp.einsum("oc,bct->bot", p["w_skip"].astype(COMPUTE_DTYPE), gate_c,
                      preferred_element_type=jnp.float32) + p["b_skip"][None]
    res = jnp.einsum("oc,bct->bot", p["w_res"].astype(COMPUTE_DTYPE), gate_c,
                     preferred_element_type=jnp.float32) + p["b_res"][None]
    return x + res, skip_in + skip


# ---------------------------------------------------------------------------
# Deterministic parameter construction (BatchNorm folded, eval mode)
# ---------------------------------------------------------------------------
def make_conv_params(key, out_ch, in_ch, k, *, with_bn=True, prelu=False):
    k_w, k_b, k_g, k_be, k_m, k_v = jax.random.split(key, 6)
    w = jax.random.normal(k_w, (out_ch, in_ch, k), jnp.float32) / math.sqrt(in_ch * k)
    b = 0.05 * jax.random.normal(k_b, (out_ch,), jnp.float32)
    if with_bn:
        # eval-mode BatchNorm1d folded into the conv weight/bias
        gamma = 1.0 + 0.1 * jax.random.normal(k_g, (out_ch,), jnp.float32)
        beta = 0.1 * jax.random.normal(k_be, (out_ch,), jnp.float32)
        mean = 0.1 * jax.random.normal(k_m, (out_ch,), jnp.float32)
        var = jax.random.uniform(k_v, (out_ch,), jnp.float32, 0.5, 1.5)
        scale = gamma / jnp.sqrt(var + 1e-5)
        w = w * scale[:, None, None]
        b = (b - mean) * scale + beta
    p = {
        # flatten (O, C, K) -> (O, K*C) matching unfold_time's row order k*C + c
        "w": jnp.transpose(w, (0, 2, 1)).reshape(out_ch, k * in_ch),
        "b": b.reshape(out_ch, 1),
    }
    if prelu:
        p["alpha"] = jnp.full((out_ch, 1), 0.25, jnp.float32)  # nn.PReLU default
    return p


def make_wavenet_params(key, residual_dim, gate_dim, skip_dim, kernel_size,
                        dilation_list, n_stages, cond_dim):
    layers = []
    keys = jax.random.split(key, n_stages * len(dilation_list))
    i = 0
    for _ in range(n_stages):
        for _d in dilation_list:
            kg, kc, ks, kr = jax.random.split(keys[i], 4)
            gate = make_conv_params(kg, 2 * gate_dim, residual_dim, kernel_size,
                                    with_bn=True)   # BN(bn_momentum) folded
            layer = {"w_gate": gate["w"], "b_gate": gate["b"]}
            if cond_dim is not None:
                cnd = make_conv_params(kc, 2 * gate_dim, cond_dim, 1, with_bn=False)
                layer["w_cond"] = cnd["w"]
                layer["b_gate"] = layer["b_gate"] + cnd["b"]
            skp = make_conv_params(ks, skip_dim, gate_dim, 1, with_bn=False)
            rsp = make_conv_params(kr, residual_dim, gate_dim, 1, with_bn=False)
            layer.update(w_skip=skp["w"], b_skip=skp["b"],
                         w_res=rsp["w"], b_res=rsp["b"])
            layers.append(layer)
            i += 1
    return layers


def make_encoder_params(key, cfg):
    k_in, k_rs, k_wn, k_o0, k_o1 = jax.random.split(key, 5)
    p = {"in": make_conv_params(k_in, cfg["residual_dim"], cfg["input_dim"], 5,
                                with_bn=True, prelu=True)}
    if cfg["down_sample_factor"] > 1:
        rw = (4 + cfg["down_sample_factor"] % 2) * cfg["down_sample_factor"]
        p["rs"] = make_conv_params(k_rs, cfg["residual_dim"], cfg["residual_dim"],
                                   rw, with_bn=True, prelu=True)
    p["wn"] = make_wavenet_params(k_wn, cfg["residual_dim"], cfg["gate_dim"],
                                  cfg["skip_dim"], cfg["kernel_size"],
                                  cfg["dilation_list"], cfg["n_stages"],
                                  cfg.get("cond_dim"))
    p["out0"] = make_conv_params(k_o0, cfg["output_dim"], cfg["skip_dim"],
                                 cfg["kernel_size"], with_bn=True, prelu=True)
    p["out1"] = make_conv_params(k_o1, cfg["output_dim"], cfg["output_dim"], 1,
                                 with_bn=False)
    return p


def make_decoder_params(key, cfg):
    k_in, k_rs, k_wn, k_o0, k_o1 = jax.random.split(key, 5)
    p = {"in": make_conv_params(k_in, 2 * cfg["residual_dim"], cfg["input_dim"],
                                cfg["kernel_size"], with_bn=True)}
    if cfg["up_sample_factor"] > 1:
        rw = (4 + cfg["up_sample_factor"] % 2) * cfg["up_sample_factor"]
        # conv-equivalent weight of ConvTranspose1d applied to zero-stuffed input
        p["rs"] = make_conv_params(k_rs, 2 * cfg["residual_dim"],
                                   cfg["residual_dim"], rw, with_bn=True)
    p["wn"] = make_wavenet_params(k_wn, cfg["residual_dim"], cfg["gate_dim"],
                                  cfg["skip_dim"], cfg["kernel_size"],
                                  cfg["dilation_list"], cfg["n_stages"],
                                  cfg.get("cond_dim"))
    p["out0"] = make_conv_params(k_o0, 2 * cfg["skip_dim"], cfg["skip_dim"],
                                 cfg["kernel_size"], with_bn=True)
    p["out1"] = make_conv_params(k_o1, cfg["output_dim"], cfg["skip_dim"], 15,
                                 with_bn=False)
    return p


# ---------------------------------------------------------------------------
# Forward pass (Encoder -> Decoder), built from the two Pallas kernels
# ---------------------------------------------------------------------------
def conv_block(p, x, *, kernel_size, dilation=1, stride=1, activation,
               use_pallas):
    x_unf = unfold_time(x, kernel_size, dilation)
    if stride > 1:
        # strided 'same' conv == full 'same' conv evaluated at every stride-th frame
        x_unf = x_unf[:, :, ::stride]
    return proj(p["w"], p["b"], x_unf, activation=activation,
                alpha=p.get("alpha"), use_pallas=use_pallas)


def conv_transpose_block(p, x, *, kernel_size, stride, activation, use_pallas):
    # TODO(synk): exact padding/flip convention of the recipe's custom
    # ConvTranspose1d(pad_mode='same') is not provided; modeled as zero-stuffing
    # by `stride` followed by a 'same' convolution with the stored weight.
    x_up = upsample_zeros(x, stride)
    return conv_block(p, x_up, kernel_size=kernel_size, activation=activation,
                      use_pallas=use_pallas)


def wavenet_forward(layers, cfg, x, cond, use_pallas):
    # TODO(synk): WaveNet internals are not in the provided source; implemented
    # as the standard gated residual stack (dilated gate conv [+ 1x1 cond proj],
    # tanh*sigmoid gate, 1x1 skip & residual projections, skip-sum output).
    b, _, t = x.shape
    skip = jnp.zeros((b, cfg["skip_dim"], t), jnp.float32)
    dilations = list(cfg["dilation_list"]) * cfg["n_stages"]
    for layer, d in zip(layers, dilations):
        x_unf = unfold_time(x, cfg["kernel_size"], d)
        if use_pallas:
            x, skip = pallas_wavenet_block(layer, x_unf, x, cond, skip)
        else:
            x, skip = ref_wavenet_block(layer, x_unf, x, cond, skip)
    return skip


def encoder_forward(p, cfg, x, use_pallas):
    h = conv_block(p["in"], x, kernel_size=5, activation="prelu",
                   use_pallas=use_pallas)
    if "rs" in p:
        rw = (4 + cfg["down_sample_factor"] % 2) * cfg["down_sample_factor"]
        h = conv_block(p["rs"], h, kernel_size=rw,
                       stride=cfg["down_sample_factor"], activation="prelu",
                       use_pallas=use_pallas)
    skip = wavenet_forward(p["wn"], cfg, h, None, use_pallas)
    h = conv_block(p["out0"], skip, kernel_size=cfg["kernel_size"],
                   activation="prelu", use_pallas=use_pallas)
    return conv_block(p["out1"], h, kernel_size=1, activation="linear",
                      use_pallas=use_pallas)


def decoder_forward(p, cfg, x, c, use_pallas):
    h = conv_block(p["in"], x, kernel_size=cfg["kernel_size"], activation="glu",
                   use_pallas=use_pallas)
    if "rs" in p:
        rw = (4 + cfg["up_sample_factor"] % 2) * cfg["up_sample_factor"]
        h = conv_transpose_block(p["rs"], h, kernel_size=rw,
                                 stride=cfg["up_sample_factor"],
                                 activation="glu", use_pallas=use_pallas)
    if c is not None:
        t_h, t_c = h.shape[2], c.shape[2]
        # TODO(synk): conditioning frame-rate alignment in the original recipe is
        # unknown; nearest-neighbour repeat to the hidden frame rate is assumed.
        assert t_h % t_c == 0
        c = jnp.repeat(c, t_h // t_c, axis=2)
    skip = wavenet_forward(p["wn"], cfg, h, c, use_pallas)
    h = conv_block(p["out0"], skip, kernel_size=cfg["kernel_size"],
                   activation="glu", use_pallas=use_pallas)
    return conv_block(p["out1"], h, kernel_size=15, activation="linear",
                      use_pallas=use_pallas)


def noise_estimator_forward(params, enc_cfg, dec_cfg, logXpHat_bft, logYp_bft,
                            use_pallas=True):
    c_bct = encoder_forward(params["enc"], enc_cfg, logXpHat_bft, use_pallas)
    return decoder_forward(params["dec"], dec_cfg, logYp_bft - logXpHat_bft,
                           c_bct, use_pallas)


# ---------------------------------------------------------------------------
if __name__ == "__main__":
    B, F, T = 2, 32, 64
    enc_cfg = dict(input_dim=F, output_dim=16, residual_dim=24, gate_dim=24,
                   skip_dim=24, kernel_size=3, dilation_list=[1, 2, 4],
                   n_stages=1, down_sample_factor=2, cond_dim=None)
    dec_cfg = dict(input_dim=F, output_dim=F, residual_dim=24, gate_dim=24,
                   skip_dim=24, kernel_size=3, dilation_list=[1, 2, 4],
                   n_stages=1, up_sample_factor=2, cond_dim=16)

    key = jax.random.PRNGKey(0)
    k_enc, k_dec, k_x, k_y = jax.random.split(key, 4)
    params = {"enc": make_encoder_params(k_enc, enc_cfg),
              "dec": make_decoder_params(k_dec, dec_cfg)}

    logXpHat = jax.random.normal(k_x, (B, F, T), jnp.float32)
    logYp = jax.random.normal(k_y, (B, F, T), jnp.float32)

    out = noise_estimator_forward(params, enc_cfg, dec_cfg, logXpHat, logYp,
                                  use_pallas=True)
    out = jax.block_until_ready(out)

    # Pure-JAX reference (same bf16 casts / f32 accumulation, einsum instead of
    # Pallas) for end-to-end correctness of the kernel path.
    ref = noise_estimator_forward(params, enc_cfg, dec_cfg, logXpHat, logYp,
                                  use_pallas=False)
    ref = jax.block_until_ready(ref)

    t_out = T * dec_cfg["up_sample_factor"]
    assert out.shape == (B, dec_cfg["output_dim"], t_out), out.shape
    np.testing.assert_allclose(np.asarray(out), np.asarray(ref),
                               rtol=5e-2, atol=5e-2)
    print("KERNEL_OK")
</pallas_src>

<mosaic_0001>
module attributes {stable_mosaic.version = 11 : i64} {
  func.func @kernel(%arg0: i32, %arg1: i32, %arg2: memref<24x160xbf16, #tpu.memory_space<vmem>>, %arg3: memref<24x1xf32, #tpu.memory_space<vmem>>, %arg4: memref<24x1xf32, #tpu.memory_space<vmem>>, %arg5: memref<1x160x128xbf16, #tpu.memory_space<vmem>>, %arg6: memref<1x24x128xf32, #tpu.memory_space<vmem>>) attributes {dimension_semantics = [#tpu.dimension_semantics<parallel>, #tpu.dimension_semantics<parallel>], iteration_bounds = array<i64: 2, 1>, scalar_prefetch = 0 : i64, scratch_operands = 0 : i64, tpu.core_type = #tpu.core_type<tc>, window_params = [{pipeline_mode = #tpu.pipeline_mode<synchronous>, transform_indices = @transform_0, window_bounds = array<i64: 24, 160>}, {pipeline_mode = #tpu.pipeline_mode<synchronous>, transform_indices = @transform_1, window_bounds = array<i64: 24, 1>}, {pipeline_mode = #tpu.pipeline_mode<synchronous>, transform_indices = @transform_2, window_bounds = array<i64: 24, 1>}, {transform_indices = @transform_3, window_bounds = array<i64: 1, 160, 128>}, {transform_indices = @transform_4, window_bounds = array<i64: 1, 24, 128>}]} {
    %c0 = arith.constant 0 : index
    %c0_0 = arith.constant 0 : index
    %0 = vector.load %arg2[%c0, %c0_0] : memref<24x160xbf16, #tpu.memory_space<vmem>>, vector<24x160xbf16>
    %c0_1 = arith.constant 0 : index
    %c0_2 = arith.constant 0 : index
    %c0_3 = arith.constant 0 : index
    %1 = vector.load %arg5[%c0_1, %c0_2, %c0_3] : memref<1x160x128xbf16, #tpu.memory_space<vmem>>, vector<1x160x128xbf16>
    %2 = vector.shape_cast %1 : vector<1x160x128xbf16> to vector<160x128xbf16>
    %cst = arith.constant dense<0.000000e+00> : vector<24x128xf32>
    %3 = tpu.matmul %0, %2, %cst {dimension_numbers = #tpu.dot_dimension_numbers<[1], [0], [0], [1], [0, 0, 1, 1], [], []>} : vector<24x160xbf16>, vector<160x128xbf16>, vector<24x128xf32> -> vector<24x128xf32>
    %c0_4 = arith.constant 0 : index
    %c0_5 = arith.constant 0 : index
    %4 = vector.load %arg3[%c0_4, %c0_5] : memref<24x1xf32, #tpu.memory_space<vmem>>, vector<24x1xf32>
    %5 = vector.broadcast %4 : vector<24x1xf32> to vector<24x128xf32>
    %6 = arith.addf %3, %5 : vector<24x128xf32>
    %cst_6 = arith.constant 0.000000e+00 : f32
    %7 = vector.broadcast %cst_6 : f32 to vector<24x128xf32>
    %8 = arith.cmpf oge, %6, %7 : vector<24x128xf32>
    %c0_7 = arith.constant 0 : index
    %c0_8 = arith.constant 0 : index
    %9 = vector.load %arg4[%c0_7, %c0_8] : memref<24x1xf32, #tpu.memory_space<vmem>>, vector<24x1xf32>
    %10 = vector.broadcast %9 : vector<24x1xf32> to vector<24x128xf32>
    %11 = arith.mulf %10, %6 : vector<24x128xf32>
    %12 = arith.select %8, %6, %11 : vector<24x128xi1>, vector<24x128xf32>
    %c0_9 = arith.constant 0 : index
    %c0_10 = arith.constant 0 : index
    %c0_11 = arith.constant 0 : index
    %13 = vector.load %arg6[%c0_9, %c0_10, %c0_11] : memref<1x24x128xf32, #tpu.memory_space<vmem>>, vector<1x24x128xf32>
    %14 = vector.shape_cast %13 : vector<1x24x128xf32> to vector<24x128xf32>
    %15 = vector.shape_cast %12 : vector<24x128xf32> to vector<1x24x128xf32>
    tpu.vector_store %arg6[%c0_9, %c0_10, %c0_11], %15 {strides = array<i32>} : memref<1x24x128xf32, #tpu.memory_space<vmem>>, vector<1x24x128xf32>,
    return
  }
  func.func @transform_0(%arg0: i32, %arg1: i32) -> (i32, i32) {
    %c0_i32 = arith.constant 0 : i32
    %c0_i32_0 = arith.constant 0 : i32
    %c0_i32_1 = arith.constant 0 : i32
    return %c0_i32, %c0_i32_0 : i32, i32
  }
  func.func @transform_1(%arg0: i32, %arg1: i32) -> (i32, i32) {
    %c0_i32 = arith.constant 0 : i32
    %c0_i32_0 = arith.constant 0 : i32
    %c0_i32_1 = arith.constant 0 : i32
    return %c0_i32, %c0_i32_0 : i32, i32
  }
  func.func @transform_2(%arg0: i32, %arg1: i32) -> (i32, i32) {
    %c0_i32 = arith.constant 0 : i32
    %c0_i32_0 = arith.constant 0 : i32
    %c0_i32_1 = arith.constant 0 : i32
    return %c0_i32, %c0_i32_0 : i32, i32
  }
  func.func @transform_3(%arg0: i32, %arg1: i32) -> (i32, i32, i32) {
    %c0_i32 = arith.constant 0 : i32
    %c0_i32_0 = arith.constant 0 : i32
    return %arg0, %c0_i32, %arg1 : i32, i32, i32
  }
  func.func @transform_4(%arg0: i32, %arg1: i32) -> (i32, i32, i32) {
    %c0_i32 = arith.constant 0 : i32
    %c0_i32_0 = arith.constant 0 : i32
    return %arg0, %c0_i32, %arg1 : i32, i32, i32
  }
}

</mosaic_0001>

<bundles_post_ra>
// kernel: tpu_custom_call.1
= control target key start
LH: loop header
LB: loop body
LE: loop exit
PB: predicated region body
PF: predicated region fallthrough
CT: control target
= control target key end

     0   :  { %9 = vsyncpa [#allocation3], 0  ;;  %s1021_s0 = inlined_call_operand.vmem [shape: bf16[24,160], index: 0, kind: input, shape index: {}]   ;;  %s1022_s1 = inlined_call_operand.vmem [shape: f32[24,1], index: 1, kind: input, shape index: {}]   ;;  %s1023_s2 = inlined_call_operand.vmem [shape: f32[24,1], index: 2, kind: input, shape index: {}]   ;;  %s1024_s3 = inlined_call_operand.hbm [shape: bf16[2,160,128], index: 3, kind: input, shape index: {}]   ;;  %s1025_s4 = inlined_call_operand.hbm [shape: f32[2,24,128], index: 4, kind: output, shape index: {}]  }
   0x1   :  { %11 = vsyncpa [#allocation3 + $0x1], 0 }
   0x2   :  { %12 = vsyncpa [#allocation4], 0 }
   0x3   :  { %14 = vsyncpa [#allocation4 + $0x1], 0  ;;  %s811_s15 = smov 0   ;;  %s813_s16 = smov 0  }
   0x4   :  { %s815_s17 = smov 0   ;;  %s817_s18 = smov 0  }
   0x5   :  { %s819_s19 = smov 0   ;;  %s821_s20 = smov 0  }
   0x6 LB: > { %s535_s21 = sadd.s32 4294967295, %s777_s20   ;;  %s536_s22 = sadd.s32 4294967294, %s777_s20   ;;  %s777_s20 = sphi %s821_s20, %s20_s20   ;;  %s773_s19 = sphi %s819_s19, %s1036_s19   ;;  %s769_s18 = sphi %s817_s18, %s1035_s18   ;;  %s765_s17 = sphi %s815_s17, %s1034_s17   ;;  %s761_s16 = sphi %s813_s16, %s1033_s16   ;;  %s757_s15 = sphi %s811_s15, %s1032_s15  }
   0x7   : > { %s32_s23 = sadd.s32 1, %s773_s19  ;;  %s104_s24 = sadd.s32 1, %s765_s17 }
   0x8   : > { %p34_p0 = scmp.ge.s32.totalorder %s32_s23, 2  ;;  %p111_p1 = scmp.ne.s32.totalorder %s765_s17, %s761_s16 }
   0x9   : > { %p112_p2 = scmp.eq.s32.totalorder %s777_s20, 0  ;;  %p117_p3 = scmp.ne.s32.totalorder %s761_s16, %s757_s15 }
   0xa   : > { %s1038_s23 = smov (%p34_p0, %s32_s23), 0  ;;  %p118_p5 = scmp.eq.s32.totalorder %s535_s21, 0 }
   0xb   : > { %p852_p4 = por %p112_p2, %p111_p1  ;;  %s99_s26 = ssub.s32 %s773_s19, %s1038_s23 }
   0xc   : > { %p143_p6 = scmp.eq.s32.totalorder %s535_s21, 1  ;;  %p102_p7 = scmp.eq.s32.totalorder %s99_s26, 0 }
   0xd   : > { %p858_p8 = por %p118_p5, %p117_p3  ;;  %p149_p10 = scmp.eq.s32.totalorder %s536_s22, 1 }
   0xe   : > { %p862_p9 = por %p143_p6, %p111_p1  ;;  %p597_p13 = scmp.lt.s32.totalorder %s777_s20, 2 }
   0xf   : > { %s867_s29 = scalar_select %p102_p7, %s765_s17, %s104_s24  }
  0x10   : > { %p869_p11 = por %p149_p10, %p117_p3  ;;  %s178_s5 = sand.u32 1, %s765_s17  }
  0x11   : > { %s580_s6 = smul.u32 80, %s178_s5  ;;  %p879_p0 = pnand %p597_p13, %p852_p4 }
  0x12   : > { %s581_s7 = smul.u32 1280, %s773_s19  ;;  %p540_p1 = scmp.ge.s32.totalorder %s777_s20, 1 }
  0x13   : > { %s182_s12 = scalar_lea.vmem [#allocation2], %s580_s6  ;;  %s179_s14 = scalar_lea.sflag [#allocation3], %s178_s5 }
  0x14   : > { %s189_s11 = scalar_lea.hbm %s1024_s3, %s581_s7  ;;  %s190_s13 = sshll.u32 %s182_s12, 4  ;;  %s191_s13 = int_to_ptr.vmem [resolvable:$true] %s190_s13 }
  0x15   : > { %p671_p2 = pneg %p879_p0  ;;  %s682_s21 = scalar_lea.vmem %s191_s13, 1280 }
  0x16   : > { %p683_p3 = scmp.ne.s32.totalorder %s191_s13, %s682_s21  ;;  %s779_s22 = smov [#allocation2]  }
  0x17   : > { %s687_s24 = sshll.u32 %s779_s22, 4  ;;  %s688_s24 = int_to_ptr.vmem [resolvable:$false] %s687_s24 }
  0x18   : > { %p685_p5 = pnand %p683_p3, %p671_p2  ;;  %s689_s25 = scalar_lea.vmem %s688_s24, 2560 }
  0x19   : > { %p690_p4 = scmp.lt.s32.totalorder %s191_s13, %s688_s24  ;;  %p691_p7 = scmp.lt.s32.totalorder %s689_s25, %s682_s21 }
  0x1a   : > { %p686_p6 = pneg %p685_p5 }
  0x1b   : > { %p692_p10 = por %p691_p7, %p690_p4 }
  0x1d   : > { %p693_p13 = pnand %p692_p10, %p686_p6 }
  0x1f   : > { %696 = shalt.err (!%p693_p13)
}
  0x20   : > { %s780_s26 = smov 64   ;;  %s781_s5 = smov 4  }
  0x21   : > { %592 = dma.hbm_to_vmem [thread:$0]  (!%p879_p0), %s189_s11, 1280, %s191_s13, %s179_s14, %s780_s26, %s780_s26, %s781_s5  }
  0x22   : > { %p198_p12 = scmp.lt.s32.totalorder %s777_s20, 3 }
  0x24   : > { %p199_p2 = pnand %p540_p1, %p198_p12 }
  0x25   : > { %s895_s6 = sand.u32 (!%p199_p2), 1, %s761_s16  }
  0x26   : > { %202 = sbr.rel (%p199_p2) target bundleno = 302 (0x12e), region = 36  ;;  %s205_s9 = scalar_lea.sflag (!%p199_p2), [#allocation3], %s895_s6 }
  0x27   : > { %s582_s7 = smul.u32 (!%p199_p2), 80, %s895_s6 }
  0x29   : > { %s899_s10 = scalar_lea.vmem (!%p199_p2), [#allocation2], %s582_s7 }
  0x2b   : > { %748 = dma.done.wait (%p858_p8), %s205_s9, 1280  }
  0x2c   : > { %750 = vsyncadd (%p858_p8), %s205_s9, 4294966016  ;;  %v782_v0 = vmov 0   ;;  %v654_v1 = vld [vmem:[%s899_s10 + $0x38] sm:$0xff]   ;;  %v655_v2 = vld [vmem:[%s899_s10 + $0x30] sm:$0xff]   ;;  %vm350_vm0 = vcmask 261120   ;;  %s583_s13 = smul.u32 24, %s895_s6 }
  0x2d   : > { %357 = vmatprep.subr.bf16.mxu0 %v782_v0  ;;  %560 = vmatprep.subr.bf16.mxu1 %v782_v0  ;;  %v656_v3 = vld [vmem:[%s899_s10 + $0x28] sm:$0xff]   ;;  %v657_v4 = vld [vmem:[%s899_s10 + $0x20] sm:$0xff]   ;;  %v658_v11 = vld [vmem:[%s899_s10 + $0x18] sm:$0xff]   ;;  %s584_s21 = smul.u32 384, %s769_s18  ;;  %s436_s25 = scalar_lea.sflag [#allocation4], %s895_s6 }
  0x2e   : > { %653 = vset.pattern.permute.xlu1 %v782_v0  ;;  %652 = vset.pattern.permute.xlu0 %v782_v0  ;;  %v666_v5 = vld [vmem:[%s1021_s0 + $0x4] ss:$8 sps:$4 sm:$0xff]   ;;  %v236_v6 = vld [vmem:[%s1021_s0 + $0x10] sm:$0xff]  ;;  %v664_v20 = vld [vmem:[%s1021_s0] ss:$8 sps:$4 sm:$0xff]   ;;  %s783_s5 = smov [#allocation5]  }
  0x2f   : > { %358 = vmatpush1.bf16.msra.mxu0 %v654_v1  ;;  %570 = vmatpush1.bf16.msra.mxu1 %v654_v1  ;;  %v259_v7 = vld [vmem:[%s1022_s1 + $0x10] sm:$0xff]  ;;  %v544_v8 = vcombine.high %v236_v6, %v236_v6  ;;  %v257_v9 = vld [vmem:[%s1022_s1] sm:$0xff]  ;;  %v258_v12 = vld [vmem:[%s1022_s1 + $0x8] sm:$0xff]  ;;  %v543_v21 = vcombine.low %v236_v6, %v236_v6  ;;  %s973_s24 = scalar_lea.hbm %s1025_s4, %s584_s21  ;;  %s701_s7 = sshll.u32 %s783_s5, 4  ;;  %s702_s7 = int_to_ptr.vmem [resolvable:$false] %s701_s7 }
  0x30   : > { %359 = vmatprep.subr.bf16.mxu0 %v782_v0  ;;  %561 = vmatprep.subr.bf16.mxu1 %v782_v0  ;;  %v408_v10 = vld [vmem:[%s1023_s2] sm:$0xff]  ;;  %v410_v13 = vld [vmem:[%s1023_s2 + $0x10] sm:$0xff]  ;;  %v409_v15 = vld [vmem:[%s1023_s2 + $0x8] sm:$0xff]  ;;  %s703_s9 = scalar_lea.vmem %s702_s7, 768 }
  0x31   : > { %272 = vperm.xlu1 %653, %v259_v7   ;;  %555 = vmatprep.mubr.msk.bf16.mxu0 %vm350_vm0, %v666_v5  ;;  %v659_v14 = vld [vmem:[%s899_s10 + $0x10] sm:$0xff]   ;;  %v660_v16 = vld [vmem:[%s899_s10 + $0x8] sm:$0xff]   ;;  %v661_v17 = vld [vmem:[%s899_s10] sm:$0xff]  }
  0x32   : > { %262 = vperm.xlu0 %652, %v257_v9   ;;  %556 = vmatprep.mubr.msk.bf16.mxu1 %vm350_vm0, %v544_v8  ;;  %v662_v18 = vld [vmem:[%s899_s10 + $0x48] sm:$0xff]   ;;  %v663_v19 = vld [vmem:[%s899_s10 + $0x40] sm:$0xff]   ;;  %s232_s10 = scalar_lea.vmem [#allocation5], %s583_s13 }
  0x33   : > { %360 = vmatpush1.bf16.msra.mxu0 %v655_v2  ;;  %571 = vmatpush1.bf16.msra.mxu1 %v655_v2  ;;  %s450_s14 = sshll.u32 %s232_s10, 4  ;;  %s968_s14 = int_to_ptr.vmem [resolvable:$true] %s450_s14 }
  0x34   : > { %361 = vmatprep.subr.bf16.mxu0 %v782_v0  ;;  %562 = vmatprep.subr.bf16.mxu1 %v782_v0  ;;  %s697_s26 = scalar_lea.vmem %s968_s14, 384  ;;  %p704_p1 = scmp.lt.s32.totalorder %s968_s14, %s702_s7 }
  0x35   : > { %413 = vperm.xlu1 %653, %v408_v10   ;;  %p698_p8 = scmp.ne.s32.totalorder %s968_s14, %s697_s26  ;;  %p705_p3 = scmp.lt.s32.totalorder %s703_s9, %s697_s26 }
  0x36   : > { %267 = vperm.xlu0 %652, %v258_v12  }
  0x37   : > { %362 = vmatpush1.bf16.msra.mxu0 %v656_v3  ;;  %572 = vmatpush1.bf16.msra.mxu1 %v656_v3  ;;  %p699_p12 = pnand %p698_p8, %p862_p9  ;;  %p706_p5 = por %p705_p3, %p704_p1 }
  0x38   : > { %363 = vmatprep.subr.bf16.mxu0 %v782_v0  ;;  %563 = vmatprep.subr.bf16.mxu1 %v782_v0 }
  0x39   : > { %423 = vperm.xlu1 %653, %v410_v13   ;;  %p700_p0 = pneg %p699_p12 }
  0x3a   : > { %418 = vperm.xlu0 %652, %v409_v15  }
  0x3b   : > { %364 = vmatpush1.bf16.msra.mxu0 %v657_v4  ;;  %573 = vmatpush1.bf16.msra.mxu1 %v657_v4  ;;  %p707_p6 = pnand %p706_p5, %p700_p0 }
  0x3c   : > { %365 = vmatprep.subr.bf16.mxu0 %v782_v0  ;;  %564 = vmatprep.subr.bf16.mxu1 %v782_v0 }
  0x3f   : > { %366 = vmatpush1.bf16.msra.mxu0 %v658_v11  ;;  %574 = vmatpush1.bf16.msra.mxu1 %v658_v11 }
  0x40   : > { %367 = vmatprep.subr.bf16.mxu0 %v782_v0  ;;  %565 = vmatprep.subr.bf16.mxu1 %v782_v0 }
  0x43   : > { %368 = vmatpush1.bf16.msra.mxu0 %v659_v14  ;;  %575 = vmatpush1.bf16.msra.mxu1 %v659_v14 }
  0x44   : > { %369 = vmatprep.subr.bf16.mxu0 %v782_v0  ;;  %566 = vmatprep.subr.bf16.mxu1 %v782_v0 }
  0x47   : > { %370 = vmatpush1.bf16.msra.mxu0 %v660_v16  ;;  %576 = vmatpush1.bf16.msra.mxu1 %v660_v16 }
  0x48   : > { %371 = vmatprep.subr.bf16.mxu0 %v782_v0  ;;  %567 = vmatprep.subr.bf16.mxu1 %v782_v0 }
  0x4b   : > { %372 = vmatpush1.bf16.msra.mxu0 %v661_v17  ;;  %577 = vmatpush1.bf16.msra.mxu1 %v661_v17 }
  0x4c   : > { %385 = vmatprep.subr.bf16.mxu0 %v782_v0  ;;  %568 = vmatprep.subr.bf16.mxu1 %v782_v0 }
  0x4f   : > { %386 = vmatpush2.bf16.msra.mxu0 %v662_v18  ;;  %578 = vmatpush2.bf16.msra.mxu1 %v662_v18 }
  0x50   : > { %387 = vmatprep.subr.bf16.mxu0 %v782_v0  ;;  %569 = vmatprep.subr.bf16.mxu1 %v782_v0 }
  0x53   : > { %388 = vmatpush2.bf16.msra.mxu0 %v663_v19  ;;  %579 = vmatpush2.bf16.msra.mxu1 %v663_v19 }
  0x56   : > { %390 = vmatmul.mubr.bf16.vlgmr.msra.gmra.mxu0 %v664_v20  ;;  %398 = vmatmul.mubr.bf16.vlgmr.msra.gmra.mxu1 %v543_v21 }
  0xac   : > { %v273_v22 = vpop.permute.xlu1 %272 }
  0xad   : > { %v263_v23 = vpop.permute.xlu0 %262 }
  0xb0   : > { %v414_v24 = vpop.permute.xlu1 %413 }
  0xb1   : > { %v268_v25 = vpop.permute.xlu0 %267 }
  0xb4   : > { %v424_v28 = vpop.permute.xlu1 %423 }
  0xb5   : > { %v419_v37 = vpop.permute.xlu0 %418 }
 0x116   : > { %v391_v26 = vpop.f32.mrf.mxu0  ;;  %v399_v27 = vpop.f32.mrf.mxu1 }
 0x117   : > { %v392_v29 = vadd.f32 %v391_v26, %v263_v23  ;;  %v400_v30 = vadd.f32 %v399_v27, %v273_v22 }
 0x118   : > { %v393_v31 = vpop.f32.mrf.mxu0  ;;  %v401_v32 = vpop.f32.mrf.mxu1 }
 0x119   : > { %vm405_vm1 = vcmp.ge.f32.partialorder %v392_v29, 0.0  ;;  %v426_v33 = vmul.f32 %v414_v24, %v392_v29  ;;  %vm407_vm2 = vcmp.ge.f32.partialorder %v400_v30, 0.0  ;;  %v428_v34 = vmul.f32 %v424_v28, %v400_v30 }
 0x11a   : > { %v394_v35 = vpop.f32.mrf.mxu0  ;;  %v402_v36 = vpop.f32.mrf.mxu1 }
 0x11b   : > { %v429_v38 = vsel %vm405_vm1, %v392_v29, %v426_v33  ;;  %v431_v39 = vsel %vm407_vm2, %v400_v30, %v428_v34  ;;  %v395_v40 = vadd.f32 %v394_v35, %v268_v25 }
 0x11c   : > { %432 = vst [vmem:[%s232_s10] sm:$0xff] %v429_v38  ;;  %434 = vst [vmem:[%s232_s10 + $0x10] sm:$0xff] %v431_v39  ;;  %v396_v41 = vpop.f32.mrf.mxu0  ;;  %v403_v42 = vpop.f32.mrf.mxu1 }
 0x11d   : > { %vm406_vm3 = vcmp.ge.f32.partialorder %v395_v40, 0.0  ;;  %v427_v43 = vmul.f32 %v419_v37, %v395_v40 }
 0x11f   : > { %v430_v44 = vsel %vm406_vm3, %v395_v40, %v427_v43 }
 0x120   : > { %433 = vst [vmem:[%s232_s10 + $0x8] sm:$0xff] %v430_v44 }
 0x121   : > { %710 = shalt.err (!%p707_p6)
}
 0x122   : > { %s711_s27 = scalar_lea.hbm %s973_s24, 384  ;;  %s715_s12 = scalar_lea.hbm %s1025_s4, 768 }
 0x123   : > { %p712_p4 = scmp.ne.s32.totalorder %s973_s24, %s711_s27  ;;  %p716_p13 = scmp.lt.s32.totalorder %s973_s24, %s1025_s4 }
 0x124   : > { %p717_p2 = scmp.lt.s32.totalorder %s715_s12, %s711_s27 }
 0x125   : > { %p713_p7 = pnand %p712_p4, %p862_p9 }
 0x126   : > { %p718_p8 = por %p717_p2, %p716_p13 }
 0x127   : > { %p714_p10 = pneg %p713_p7 }
 0x129   : > { %p719_p12 = pnand %p718_p8, %p714_p10 }
 0x12b   : > { %722 = shalt.err (!%p719_p12)
}
 0x12c   : > { %s784_s21 = smov 128   ;;  %s785_s18 = smov 8  }
 0x12d   : > { %587 = dma.vmem_to_hbm [thread:$0]  (%p862_p9), %s968_s14, 384, %s973_s24, %s436_s25, %s784_s21, %s784_s21, %s785_s18  }
 0x12e PF: > { %s465_s22 = sand.u32 1, %s757_s15   ;;  %p1031_p0 = scmp.ge.s32.totalorder %s777_s20, 2 }
 0x12f   : > { %s466_s26 = scalar_lea.sflag [#allocation4], %s465_s22 }
 0x130   : > { %p594_p1 = pnand %p1031_p0, %p869_p11 }
 0x132   : > { %p595_p3 = pneg %p594_p1 }
 0x134   : > { %752 = dma.done.wait (%p595_p3), %s466_s26, 384  }
 0x135   : > { %754 = vsyncadd (%p595_p3), %s466_s26, 4294966912  ;;  %s20_s20 = sadd.s32 1, %s777_s20   ;;  %s1032_s15 = smov %s761_s16 }
 0x136   : > { %p17_p5 = scmp.ge.s32.totalorder %s20_s20, 4   ;;  %s1033_s16 = smov %s765_s17 }
 0x137   : > { %s1034_s17 = smov %s867_s29  ;;  %s1035_s18 = smov %s773_s19 }
 0x138   : > { %s1036_s19 = smov %s1038_s23  ;;  %19 = sbr.rel (!%p17_p5) target bundleno = 6 (0x6), region = 81 }
 0x13d   :  { %471 = vsyncpa [#allocation3], 1 }
 0x13e   :  { %473 = vsyncpa [#allocation3 + $0x1], 1 }
 0x13f   :  { %474 = vsyncpa [#allocation4], 1 }
 0x140   :  { %476 = vsyncpa [#allocation4 + $0x1], 1 }

</bundles_post_ra>
